<compile_context>
chip_gen: v5e
topology: v5e:2x2
jax: 0.10.0
libtpu: 0.0.40
codegen_flags: <defaults>
</compile_context>

<pallas_src>
import functools

import jax
import jax.numpy as jnp
from jax.experimental import pallas as pl
from jax.experimental.pallas import tpu as pltpu

BN_EPS = 1e-5
LANE = 128
SUBLANE = 8


def _round_up(n, m):
    return ((n + m - 1) // m) * m


def _regnet_kernel(x_ref, wa_ref, wb_ref, v_ref, o_ref, xs_ref, *,
                   in_size, k0, d1, d2, d3, inv_b):
    """wa_ref: narrow slab  [k0 + d1 + d2, max(d1, d3)]  holding w1 | w5 | w7.
       wb_ref: wide slab    [d1, d2]                     holding w6.
       v_ref : rows = g1, be1, g5, be5, g6, be6, b7 (lane-padded)."""

    def bn_relu(h, g, be):
        # Training-mode BatchNorm1d, two-pass (centered) variance, folded affine.
        mean = jnp.sum(h, axis=0, keepdims=True) * inv_b
        c = h - mean
        var = jnp.sum(c * c, axis=0, keepdims=True) * inv_b
        scale = g * jax.lax.rsqrt(var + BN_EPS)
        return jnp.maximum(c * scale + be, 0.0)

    # Zero-extend x to the sublane-aligned contraction width k0 in VMEM
    # (avoids a per-call pad op in the wrapper).
    xs_ref[...] = jnp.zeros_like(xs_ref)
    xs_ref[:, 0:in_size] = x_ref[...]

    # fc1 -> bn1 -> relu   (pre-BN linear bias cancels exactly; omitted)
    h = jnp.dot(xs_ref[...], wa_ref[0:k0, 0:d1],
                preferred_element_type=jnp.float32)
    h = bn_relu(h, v_ref[0:1, 0:d1], v_ref[1:2, 0:d1])

    # fc5 -> bn5 -> relu
    h = jnp.dot(h, wa_ref[k0:k0 + d1, 0:d1],
                preferred_element_type=jnp.float32)
    h = bn_relu(h, v_ref[2:3, 0:d1], v_ref[3:4, 0:d1])

    # fc6 -> bn6 -> relu   (wide weight slab)
    h = jnp.dot(h, wb_ref[...], preferred_element_type=jnp.float32)
    h = bn_relu(h, v_ref[4:5, 0:d2], v_ref[5:6, 0:d2])

    # fc7 + b7  (no BN, no relu)
    r7 = k0 + d1
    h = jnp.dot(h, wa_ref[r7:r7 + d2, 0:d3],
                preferred_element_type=jnp.float32)
    o_ref[...] = h + v_ref[6:7, 0:d3]


def prepare_params(params):
    """One-time packing of the module parameters into lane-aligned slabs.

    Call this once at parameter-load time; pass the result to regnet_forward
    on every step (no per-call packing ops)."""
    in_size, hidden = params["w1"].shape
    mid = params["w6"].shape[1]
    out_size = params["w7"].shape[1]

    k0 = _round_up(in_size, SUBLANE)
    d1 = _round_up(hidden, LANE)
    d2 = _round_up(mid, LANE)
    d3 = _round_up(out_size, LANE)
    wn = max(d1, d3)            # narrow-slab width (fc1/fc5/fc7 outputs)
    wv = max(d1, d2, d3)        # vector-slab width

    # Narrow weight slab: w1 rows [0,k0), w5 rows [k0,k0+d1), w7 rows [k0+d1, ...).
    wa = jnp.zeros((k0 + d1 + d2, wn), jnp.float32)
    wa = wa.at[0:in_size, 0:hidden].set(params["w1"])
    wa = wa.at[k0:k0 + hidden, 0:hidden].set(params["w5"])
    wa = wa.at[k0 + d1:k0 + d1 + mid, 0:out_size].set(params["w7"])

    # Wide weight slab: w6.
    wb = jnp.zeros((d1, d2), jnp.float32)
    wb = wb.at[0:hidden, 0:mid].set(params["w6"])

    # Vector slab: gamma/beta per BN layer + final bias (pre-BN biases dropped).
    v = jnp.zeros((8, wv), jnp.float32)
    v = v.at[0, 0:hidden].set(params["g1"].reshape(-1))
    v = v.at[1, 0:hidden].set(params["be1"].reshape(-1))
    v = v.at[2, 0:hidden].set(params["g5"].reshape(-1))
    v = v.at[3, 0:hidden].set(params["be5"].reshape(-1))
    v = v.at[4, 0:mid].set(params["g6"].reshape(-1))
    v = v.at[5, 0:mid].set(params["be6"].reshape(-1))
    v = v.at[6, 0:out_size].set(params["b7"].reshape(-1))

    return {
        "wa": jax.device_put(wa),
        "wb": jax.device_put(wb),
        "v": jax.device_put(v),
        "dims": (in_size, k0, d1, d2, d3),
        "out_size": out_size,
    }


def regnet_forward(x, packed):
    """x: [B, input_size] float32.  packed: output of prepare_params()."""
    B = x.shape[0]
    in_size, k0, d1, d2, d3 = packed["dims"]
    out_size = packed["out_size"]
    wa, wb, v = packed["wa"], packed["wb"], packed["v"]

    kernel = functools.partial(
        _regnet_kernel,
        in_size=in_size, k0=k0, d1=d1, d2=d2, d3=d3,
        inv_b=1.0 / B)   # NOTE: B is a compile-time constant (retrace on change)

    out_pad = pl.pallas_call(
        kernel,
        grid=(),
        in_specs=[
            pl.BlockSpec((B, in_size), lambda: (0, 0)),   # full-array block
            pl.BlockSpec(wa.shape, lambda: (0, 0)),
            pl.BlockSpec(wb.shape, lambda: (0, 0)),
            pl.BlockSpec(v.shape, lambda: (0, 0)),
        ],
        out_specs=pl.BlockSpec((B, d3), lambda: (0, 0)),
        out_shape=jax.ShapeDtypeStruct((B, d3), jnp.float32),
        scratch_shapes=[pltpu.VMEM((B, k0), jnp.float32)],
    )(x, wa, wb, v)

    return out_pad[:, 0:out_size]


def init_params(key, input_size, output_size, hidden):
    """Deterministic synthetic init mirroring the module's parameter shapes.

    PyTorch Linear weight is [out, in]; we store the transpose [in, out]."""
    ks = jax.random.split(key, 8)

    def xavier_t(k, fan_in, fan_out):
        std = (2.0 / (fan_in + fan_out)) ** 0.5
        return std * jax.random.normal(k, (fan_in, fan_out), dtype=jnp.float32)

    def default_t(k, fan_in, fan_out):
        bound = 1.0 / (fan_in ** 0.5)
        return jax.random.uniform(k, (fan_in, fan_out), jnp.float32, -bound, bound)

    def bias(k, n, fan_in):
        bound = 1.0 / (fan_in ** 0.5)
        return jax.random.uniform(k, (1, n), jnp.float32, -bound, bound)

    return {
        "w1": xavier_t(ks[0], input_size, hidden),
        "b1": bias(ks[1], hidden, input_size),
        "g1": jnp.ones((1, hidden), jnp.float32),
        "be1": jnp.zeros((1, hidden), jnp.float32),

        "w5": xavier_t(ks[2], hidden, hidden),
        "b5": bias(ks[3], hidden, hidden),
        "g5": jnp.ones((1, hidden), jnp.float32),
        "be5": jnp.zeros((1, hidden), jnp.float32),

        "w6": default_t(ks[4], hidden, 300),
        "b6": bias(ks[5], 300, hidden),
        "g6": jnp.ones((1, 300), jnp.float32),
        "be6": jnp.zeros((1, 300), jnp.float32),

        "w7": default_t(ks[6], 300, output_size),
        "b7": bias(ks[7], output_size, 300),
    }


def regnet_reference(x, p):
    """Pure-JAX reference (two-pass BN, unpadded, biases included)."""
    def bn_relu(h, g, be):
        m = jnp.mean(h, axis=0, keepdims=True)
        v = jnp.mean((h - m) ** 2, axis=0, keepdims=True)
        return jnp.maximum((h - m) / jnp.sqrt(v + BN_EPS) * g + be, 0.0)

    h = x @ p["w1"] + p["b1"]
    h = bn_relu(h, p["g1"], p["be1"])
    h = h @ p["w5"] + p["b5"]
    h = bn_relu(h, p["g5"], p["be5"])
    h = h @ p["w6"] + p["b6"]
    h = bn_relu(h, p["g6"], p["be6"])
    return h @ p["w7"] + p["b7"]


if __name__ == "__main__":
    B, INPUT_SIZE, OUTPUT_SIZE, HIDDEN = 8, 6, 5, 32

    key = jax.random.PRNGKey(0)
    kx, kp = jax.random.split(key)
    x = jax.random.normal(kx, (B, INPUT_SIZE), dtype=jnp.float32)
    params = init_params(kp, INPUT_SIZE, OUTPUT_SIZE, HIDDEN)

    packed = prepare_params(params)          # one-time packing (off the hot path)
    out = regnet_forward(x, packed)
    out = jax.block_until_ready(out)

    ref = regnet_reference(x, params)
    assert out.shape == (B, OUTPUT_SIZE)
    assert jnp.allclose(out, ref, atol=1e-4, rtol=1e-4), "mismatch vs reference"

    print("KERNEL_OK")
</pallas_src>

<mosaic_0001>
module attributes {stable_mosaic.version = 11 : i64} {
  func.func @_regnet_kernel(%arg0: memref<8x6xf32, #tpu.memory_space<vmem>>, %arg1: memref<520x128xf32, #tpu.memory_space<vmem>>, %arg2: memref<128x384xf32, #tpu.memory_space<vmem>>, %arg3: memref<8x384xf32, #tpu.memory_space<vmem>>, %arg4: memref<8x128xf32, #tpu.memory_space<vmem>>, %arg5: memref<8x8xf32, #tpu.memory_space<vmem>>) attributes {dimension_semantics = [], scalar_prefetch = 0 : i64, scratch_operands = 1 : i64, tpu.core_type = #tpu.core_type<tc>} {
    %cst = arith.constant 0.000000e+00 : f32
    %0 = vector.broadcast %cst : f32 to vector<8x8xf32>
    %c0 = arith.constant 0 : index
    %c0_0 = arith.constant 0 : index
    %1 = vector.load %arg5[%c0, %c0_0] : memref<8x8xf32, #tpu.memory_space<vmem>>, vector<8x8xf32>
    tpu.vector_store %arg5[%c0, %c0_0], %0 {strides = array<i32>} : memref<8x8xf32, #tpu.memory_space<vmem>>, vector<8x8xf32>,
    %c0_1 = arith.constant 0 : index
    %c0_2 = arith.constant 0 : index
    %2 = vector.load %arg0[%c0_1, %c0_2] : memref<8x6xf32, #tpu.memory_space<vmem>>, vector<8x6xf32>
    %c0_3 = arith.constant 0 : index
    %c0_4 = arith.constant 0 : index
    %3 = vector.load %arg5[%c0_3, %c0_4] : memref<8x8xf32, #tpu.memory_space<vmem>>, vector<8x6xf32>
    tpu.vector_store %arg5[%c0_3, %c0_4], %2 {strides = array<i32>} : memref<8x8xf32, #tpu.memory_space<vmem>>, vector<8x6xf32>,
    %c0_5 = arith.constant 0 : index
    %c0_6 = arith.constant 0 : index
    %4 = vector.load %arg5[%c0_5, %c0_6] : memref<8x8xf32, #tpu.memory_space<vmem>>, vector<8x8xf32>
    %c0_7 = arith.constant 0 : index
    %c0_8 = arith.constant 0 : index
    %5 = vector.load %arg1[%c0_7, %c0_8] : memref<520x128xf32, #tpu.memory_space<vmem>>, vector<8x128xf32>
    %cst_9 = arith.constant dense<0.000000e+00> : vector<8x128xf32>
    %6 = tpu.matmul %4, %5, %cst_9 {dimension_numbers = #tpu.dot_dimension_numbers<[1], [0], [0], [1], [0, 0, 1, 1], [], []>} : vector<8x8xf32>, vector<8x128xf32>, vector<8x128xf32> -> vector<8x128xf32>
    %c0_10 = arith.constant 0 : index
    %c0_11 = arith.constant 0 : index
    %7 = vector.load %arg3[%c0_10, %c0_11] : memref<8x384xf32, #tpu.memory_space<vmem>>, vector<1x128xf32>
    %c1 = arith.constant 1 : index
    %c0_12 = arith.constant 0 : index
    %8 = vector.load %arg3[%c1, %c0_12] : memref<8x384xf32, #tpu.memory_space<vmem>>, vector<1x128xf32>
    %cst_13 = arith.constant dense<0.000000e+00> : vector<128xf32>
    %9 = vector.multi_reduction <add>, %6, %cst_13 [0] : vector<8x128xf32> to vector<128xf32>
    %10 = vector.shape_cast %9 : vector<128xf32> to vector<1x128xf32>
    %cst_14 = arith.constant 1.250000e-01 : f32
    %11 = vector.broadcast %cst_14 : f32 to vector<1x128xf32>
    %12 = arith.mulf %10, %11 : vector<1x128xf32>
    %13 = vector.broadcast %12 : vector<1x128xf32> to vector<8x128xf32>
    %14 = arith.subf %6, %13 : vector<8x128xf32>
    %15 = arith.mulf %14, %14 : vector<8x128xf32>
    %cst_15 = arith.constant dense<0.000000e+00> : vector<128xf32>
    %16 = vector.multi_reduction <add>, %15, %cst_15 [0] : vector<8x128xf32> to vector<128xf32>
    %17 = vector.shape_cast %16 : vector<128xf32> to vector<1x128xf32>
    %cst_16 = arith.constant 1.250000e-01 : f32
    %18 = vector.broadcast %cst_16 : f32 to vector<1x128xf32>
    %19 = arith.mulf %17, %18 : vector<1x128xf32>
    %cst_17 = arith.constant 9.99999974E-6 : f32
    %20 = vector.broadcast %cst_17 : f32 to vector<1x128xf32>
    %21 = arith.addf %19, %20 : vector<1x128xf32>
    %22 = math.rsqrt %21 : vector<1x128xf32>
    %23 = arith.mulf %7, %22 : vector<1x128xf32>
    %24 = vector.broadcast %23 : vector<1x128xf32> to vector<8x128xf32>
    %25 = arith.mulf %14, %24 : vector<8x128xf32>
    %26 = vector.broadcast %8 : vector<1x128xf32> to vector<8x128xf32>
    %27 = arith.addf %25, %26 : vector<8x128xf32>
    %cst_18 = arith.constant 0.000000e+00 : f32
    %28 = vector.broadcast %cst_18 : f32 to vector<8x128xf32>
    %29 = arith.maximumf %27, %28 : vector<8x128xf32>
    %c8 = arith.constant 8 : index
    %c0_19 = arith.constant 0 : index
    %30 = vector.load %arg1[%c8, %c0_19] : memref<520x128xf32, #tpu.memory_space<vmem>>, vector<128x128xf32>
    %cst_20 = arith.constant dense<0.000000e+00> : vector<8x128xf32>
    %31 = tpu.matmul %29, %30, %cst_20 {dimension_numbers = #tpu.dot_dimension_numbers<[1], [0], [0], [1], [0, 0, 1, 1], [], []>} : vector<8x128xf32>, vector<128x128xf32>, vector<8x128xf32> -> vector<8x128xf32>
    %c2 = arith.constant 2 : index
    %c0_21 = arith.constant 0 : index
    %32 = vector.load %arg3[%c2, %c0_21] : memref<8x384xf32, #tpu.memory_space<vmem>>, vector<1x128xf32>
    %c3 = arith.constant 3 : index
    %c0_22 = arith.constant 0 : index
    %33 = vector.load %arg3[%c3, %c0_22] : memref<8x384xf32, #tpu.memory_space<vmem>>, vector<1x128xf32>
    %cst_23 = arith.constant dense<0.000000e+00> : vector<128xf32>
    %34 = vector.multi_reduction <add>, %31, %cst_23 [0] : vector<8x128xf32> to vector<128xf32>
    %35 = vector.shape_cast %34 : vector<128xf32> to vector<1x128xf32>
    %cst_24 = arith.constant 1.250000e-01 : f32
    %36 = vector.broadcast %cst_24 : f32 to vector<1x128xf32>
    %37 = arith.mulf %35, %36 : vector<1x128xf32>
    %38 = vector.broadcast %37 : vector<1x128xf32> to vector<8x128xf32>
    %39 = arith.subf %31, %38 : vector<8x128xf32>
    %40 = arith.mulf %39, %39 : vector<8x128xf32>
    %cst_25 = arith.constant dense<0.000000e+00> : vector<128xf32>
    %41 = vector.multi_reduction <add>, %40, %cst_25 [0] : vector<8x128xf32> to vector<128xf32>
    %42 = vector.shape_cast %41 : vector<128xf32> to vector<1x128xf32>
    %cst_26 = arith.constant 1.250000e-01 : f32
    %43 = vector.broadcast %cst_26 : f32 to vector<1x128xf32>
    %44 = arith.mulf %42, %43 : vector<1x128xf32>
    %cst_27 = arith.constant 9.99999974E-6 : f32
    %45 = vector.broadcast %cst_27 : f32 to vector<1x128xf32>
    %46 = arith.addf %44, %45 : vector<1x128xf32>
    %47 = math.rsqrt %46 : vector<1x128xf32>
    %48 = arith.mulf %32, %47 : vector<1x128xf32>
    %49 = vector.broadcast %48 : vector<1x128xf32> to vector<8x128xf32>
    %50 = arith.mulf %39, %49 : vector<8x128xf32>
    %51 = vector.broadcast %33 : vector<1x128xf32> to vector<8x128xf32>
    %52 = arith.addf %50, %51 : vector<8x128xf32>
    %cst_28 = arith.constant 0.000000e+00 : f32
    %53 = vector.broadcast %cst_28 : f32 to vector<8x128xf32>
    %54 = arith.maximumf %52, %53 : vector<8x128xf32>
    %c0_29 = arith.constant 0 : index
    %c0_30 = arith.constant 0 : index
    %55 = vector.load %arg2[%c0_29, %c0_30] : memref<128x384xf32, #tpu.memory_space<vmem>>, vector<128x384xf32>
    %cst_31 = arith.constant dense<0.000000e+00> : vector<8x384xf32>
    %56 = tpu.matmul %54, %55, %cst_31 {dimension_numbers = #tpu.dot_dimension_numbers<[1], [0], [0], [1], [0, 0, 1, 1], [], []>} : vector<8x128xf32>, vector<128x384xf32>, vector<8x384xf32> -> vector<8x384xf32>
    %c4 = arith.constant 4 : index
    %c0_32 = arith.constant 0 : index
    %57 = vector.load %arg3[%c4, %c0_32] : memref<8x384xf32, #tpu.memory_space<vmem>>, vector<1x384xf32>
    %c5 = arith.constant 5 : index
    %c0_33 = arith.constant 0 : index
    %58 = vector.load %arg3[%c5, %c0_33] : memref<8x384xf32, #tpu.memory_space<vmem>>, vector<1x384xf32>
    %cst_34 = arith.constant dense<0.000000e+00> : vector<384xf32>
    %59 = vector.multi_reduction <add>, %56, %cst_34 [0] : vector<8x384xf32> to vector<384xf32>
    %60 = vector.shape_cast %59 : vector<384xf32> to vector<1x384xf32>
    %cst_35 = arith.constant 1.250000e-01 : f32
    %61 = vector.broadcast %cst_35 : f32 to vector<1x384xf32>
    %62 = arith.mulf %60, %61 : vector<1x384xf32>
    %63 = vector.broadcast %62 : vector<1x384xf32> to vector<8x384xf32>
    %64 = arith.subf %56, %63 : vector<8x384xf32>
    %65 = arith.mulf %64, %64 : vector<8x384xf32>
    %cst_36 = arith.constant dense<0.000000e+00> : vector<384xf32>
    %66 = vector.multi_reduction <add>, %65, %cst_36 [0] : vector<8x384xf32> to vector<384xf32>
    %67 = vector.shape_cast %66 : vector<384xf32> to vector<1x384xf32>
    %cst_37 = arith.constant 1.250000e-01 : f32
    %68 = vector.broadcast %cst_37 : f32 to vector<1x384xf32>
    %69 = arith.mulf %67, %68 : vector<1x384xf32>
    %cst_38 = arith.constant 9.99999974E-6 : f32
    %70 = vector.broadcast %cst_38 : f32 to vector<1x384xf32>
    %71 = arith.addf %69, %70 : vector<1x384xf32>
    %72 = math.rsqrt %71 : vector<1x384xf32>
    %73 = arith.mulf %57, %72 : vector<1x384xf32>
    %74 = vector.broadcast %73 : vector<1x384xf32> to vector<8x384xf32>
    %75 = arith.mulf %64, %74 : vector<8x384xf32>
    %76 = vector.broadcast %58 : vector<1x384xf32> to vector<8x384xf32>
    %77 = arith.addf %75, %76 : vector<8x384xf32>
    %cst_39 = arith.constant 0.000000e+00 : f32
    %78 = vector.broadcast %cst_39 : f32 to vector<8x384xf32>
    %79 = arith.maximumf %77, %78 : vector<8x384xf32>
    %c136 = arith.constant 136 : index
    %c0_40 = arith.constant 0 : index
    %80 = vector.load %arg1[%c136, %c0_40] : memref<520x128xf32, #tpu.memory_space<vmem>>, vector<384x128xf32>
    %cst_41 = arith.constant dense<0.000000e+00> : vector<8x128xf32>
    %81 = tpu.matmul %79, %80, %cst_41 {dimension_numbers = #tpu.dot_dimension_numbers<[1], [0], [0], [1], [0, 0, 1, 1], [], []>} : vector<8x384xf32>, vector<384x128xf32>, vector<8x128xf32> -> vector<8x128xf32>
    %c6 = arith.constant 6 : index
    %c0_42 = arith.constant 0 : index
    %82 = vector.load %arg3[%c6, %c0_42] : memref<8x384xf32, #tpu.memory_space<vmem>>, vector<1x128xf32>
    %83 = vector.broadcast %82 : vector<1x128xf32> to vector<8x128xf32>
    %84 = arith.addf %81, %83 : vector<8x128xf32>
    %c0_43 = arith.constant 0 : index
    %c0_44 = arith.constant 0 : index
    %85 = vector.load %arg4[%c0_43, %c0_44] : memref<8x128xf32, #tpu.memory_space<vmem>>, vector<8x128xf32>
    tpu.vector_store %arg4[%c0_43, %c0_44], %84 {strides = array<i32>} : memref<8x128xf32, #tpu.memory_space<vmem>>, vector<8x128xf32>,
    return
  }
}

</mosaic_0001>

<bundles_post_ra>
// kernel: tpu_custom_call.1
= control target key start
LH: loop header
LB: loop body
LE: loop exit
PB: predicated region body
PF: predicated region fallthrough
CT: control target
= control target key end

     0   :  { %9 = vsyncpa [#allocation4], 0  ;;  %s784_s0 = inlined_call_operand.hbm [shape: f32[8,6], index: 0, kind: input, shape index: {}]   ;;  %s785_s1 = inlined_call_operand.hbm [shape: f32[520,128], index: 1, kind: input, shape index: {}]   ;;  %s786_s2 = inlined_call_operand.hbm [shape: f32[128,384], index: 2, kind: input, shape index: {}]   ;;  %s787_s3 = inlined_call_operand.hbm [shape: f32[8,384], index: 3, kind: input, shape index: {}]   ;;  %s788_s4 = inlined_call_operand.hbm [shape: f32[8,128], index: 4, kind: output, shape index: {}]  }
   0x1   :  { %10 = vsyncpa [#allocation7], 0 }
   0x2   :  { %11 = vsyncpa [#allocation10], 0  ;;  %s28_s17 = sshll.u32 %s785_s1, 4  ;;  %s29_s17 = int_to_ptr.hbm [resolvable:$true] %s28_s17 }
   0x3   :  { %12 = vsyncpa [#allocation5], 0  ;;  %s714_s18 = smov [#allocation6]   ;;  %s18_s22 = sshll.u32 %s784_s0, 4  ;;  %s19_s22 = int_to_ptr.hbm [resolvable:$true] %s18_s22 }
   0x4   :  { %s30_s19 = sshll.u32 %s714_s18, 4  ;;  %s715_s23 = smov 128   ;;  %s31_s19 = int_to_ptr.vmem [resolvable:$true] %s30_s19 }
   0x5   :  { %s716_s24 = smov 8   ;;  %s717_s25 = smov [#allocation3]  }
   0x6   :  { %36 = dma.hbm_to_vmem [thread:$0]  %s29_s17, 8320, %s31_s19, [#allocation7], %s715_s23, %s715_s23, %s716_s24  }
   0x7   :  { %s20_s26 = sshll.u32 %s717_s25, 4  ;;  %s41_s29 = sshll.u32 %s786_s2, 4  ;;  %s21_s26 = int_to_ptr.vmem [resolvable:$true] %s20_s26  ;;  %s42_s29 = int_to_ptr.hbm [resolvable:$true] %s41_s29 }
   0x8   :  { %23 = dma.hbm_to_vmem [thread:$0]  %s19_s22, 128, %s21_s26, [#allocation4]  }
   0x9   :  { %s718_s1 = smov [#allocation8]   ;;  %s55_s0 = sshll.u32 %s787_s3, 4  ;;  %s56_s0 = int_to_ptr.hbm [resolvable:$true] %s55_s0 }
   0xa   :  { %s43_s30 = sshll.u32 %s718_s1, 4  ;;  %s719_s7 = smov 384   ;;  %s44_s30 = int_to_ptr.vmem [resolvable:$true] %s43_s30 }
   0xb   :  { %s720_s8 = smov 24   ;;  %s721_s9 = smov [#allocation9]  }
   0xc   :  { %49 = dma.hbm_to_vmem [thread:$0]  %s42_s29, 6144, %s44_s30, [#allocation7], %s719_s7, %s719_s7, %s720_s8  }
   0xd   :  { %s57_s10 = sshll.u32 %s721_s9, 4  ;;  %s58_s10 = int_to_ptr.vmem [resolvable:$true] %s57_s10 }
   0xe   :  { %60 = dma.hbm_to_vmem [thread:$0]  %s56_s0, 384, %s58_s10, [#allocation10]  }
   0xf   :  { %706 = dma.done.wait [#allocation4], 128  }
  0x10   :  { %707 = vsyncadd [#allocation4], 4294967168 }
  0x11   :  { %708 = dma.done.wait [#allocation7], 14464  }
  0x12   :  { %709 = vsyncadd [#allocation7], 4294952832 }
  0x13   :  { %710 = dma.done.wait [#allocation10], 384  }
  0x14   :  { %711 = vsyncadd [#allocation10], 4294966912  ;;  %vm77_vm0 = vcmask 64512   ;;  %v722_v0 = vmov 0.0   ;;  %vm80_vm1 = vcmask 48128   ;;  %v83_v1 = vld [vmem:[#allocation6] sm:$0xff] }
  0x15   :  { %78 = vst.msk [vmem:[#allocation2] sm:$0xff] %vm77_vm0, %v722_v0  ;;  %v79_v2 = vld [vmem:[#allocation3] sm:$0xff]  ;;  %102 = vmatpush.msra.mxu0 %v83_v1  ;;  %v155_v4 = vld [vmem:[#allocation6 + $0x80] sm:$0xff]  ;;  %v153_v8 = vld [vmem:[#allocation6 + $0x70] sm:$0xff]  ;;  %s723_s2 = smov [#allocation11]   ;;  %s553_s13 = sshll.u32 %s788_s4, 4  ;;  %s554_s13 = int_to_ptr.hbm [resolvable:$true] %s553_s13 }
  0x16   :  { %81 = vst.msk [vmem:[#allocation2] sm:$0xff] %vm80_vm1, %v79_v2  ;;  %156 = vmatpush.msra.mxu1 %v155_v4  ;;  %v154_v5 = vld [vmem:[#allocation6 + $0x78] sm:$0xff]  ;;  %v152_v10 = vld [vmem:[#allocation6 + $0x68] sm:$0xff]  ;;  %v151_v11 = vld [vmem:[#allocation6 + $0x60] sm:$0xff]  ;;  %s551_s3 = sshll.u32 %s723_s2, 4  ;;  %s552_s3 = int_to_ptr.vmem [resolvable:$true] %s551_s3 }
  0x17   :  { %v150_v13 = vld [vmem:[#allocation6 + $0x58] sm:$0xff]  ;;  %v149_v15 = vld [vmem:[#allocation6 + $0x50] sm:$0xff]  ;;  %v148_v17 = vld [vmem:[#allocation6 + $0x48] sm:$0xff] }
  0x18   :  { %157 = vmatpush.msra.mxu1 %v154_v5  ;;  %v147_v19 = vld [vmem:[#allocation6 + $0x40] sm:$0xff]  ;;  %v146_v21 = vld [vmem:[#allocation6 + $0x38] sm:$0xff]  ;;  %v145_v23 = vld [vmem:[#allocation6 + $0x30] sm:$0xff] }
  0x19   :  { %v144_v25 = vld [vmem:[#allocation6 + $0x28] sm:$0xff]  ;;  %v143_v27 = vld [vmem:[#allocation6 + $0x20] sm:$0xff]  ;;  %v142_v29 = vld [vmem:[#allocation6 + $0x18] sm:$0xff] }
  0x1a   :  { %158 = vmatpush.msra.mxu1 %v153_v8  ;;  %v141_v31 = vld [vmem:[#allocation6 + $0x10] sm:$0xff]  ;;  %v140_v33 = vld [vmem:[#allocation6 + $0x8] sm:$0xff]  ;;  %v255_v52 = vld [vmem:[#allocation8 + $0x170] sm:$0xff] }
  0x1b   :  { %v107_v43 = vld [vmem:[#allocation9] ss:$0 sm:$0xff]  ;;  %v108_v47 = vld [vmem:[#allocation9 + $0x1] ss:$0 sm:$0xff]  ;;  %v254_v51 = vld [vmem:[#allocation8 + $0x168] sm:$0xff]  ;;  %277 = vmatpush.msra.mxu3 %v255_v52 }
  0x1c   :  { %159 = vmatpush.msra.mxu1 %v152_v10  ;;  %v256_v53 = vld [vmem:[#allocation8 + $0x178] sm:$0xff]  ;;  %257 = vmatpush.msra.mxu2 %v254_v51  ;;  %v251_v54 = vld [vmem:[#allocation8 + $0x150] sm:$0xff]  ;;  %v253_v56 = vld [vmem:[#allocation8 + $0x160] sm:$0xff] }
  0x1d   :  { %v82_v3 = vld [vmem:[#allocation2] sm:$0xff]  ;;  %297 = vmatpush.msrb.mxu0 %v256_v53  ;;  %v252_v55 = vld [vmem:[#allocation8 + $0x158] sm:$0xff]  ;;  %v249_v60 = vld [vmem:[#allocation8 + $0x140] sm:$0xff] }
  0x1e   :  { %565 = vmatmul.msk.f32.vlgmr.msra.gmra.mxu0 %vm77_vm0, %v82_v3  ;;  %160 = vmatpush.msra.mxu1 %v151_v11  ;;  %v248_v59 = vld [vmem:[#allocation8 + $0x138] sm:$0xff]  ;;  %v250_v61 = vld [vmem:[#allocation8 + $0x148] sm:$0xff]  ;;  %v245_v63 = vld [vmem:[#allocation8 + $0x120] sm:$0xff]  ;;  %vm407_vm0 = vcmask 1040384  }
  0x1f   :  { %258 = vmatpush.msra.mxu2 %v251_v54  ;;  %278 = vmatpush.msra.mxu3 %v252_v55  ;;  %v246_v0 = vld [vmem:[#allocation8 + $0x128] sm:$0xff]  ;;  %v247_v1 = vld [vmem:[#allocation8 + $0x130] sm:$0xff]  ;;  %v244_v5 = vld [vmem:[#allocation8 + $0x118] sm:$0xff] }
  0x20   :  { %161 = vmatpush.msra.mxu1 %v150_v13  ;;  %298 = vmatpush.msrb.mxu0 %v253_v56  ;;  %v242_v3 = vld [vmem:[#allocation8 + $0x108] sm:$0xff]  ;;  %v243_v4 = vld [vmem:[#allocation8 + $0x110] sm:$0xff]  ;;  %v240_v8 = vld [vmem:[#allocation8 + $0xf8] sm:$0xff] }
  0x21   :  { %259 = vmatpush.msra.mxu2 %v248_v59  ;;  %279 = vmatpush.msra.mxu3 %v249_v60  ;;  %v236_v11 = vld [vmem:[#allocation8 + $0xd8] sm:$0xff]  ;;  %v238_v13 = vld [vmem:[#allocation8 + $0xe8] sm:$0xff] }
  0x22   :  { %162 = vmatpush.msra.mxu1 %v149_v15  ;;  %299 = vmatpush.msrb.mxu0 %v250_v61  ;;  %v233_v15 = vld [vmem:[#allocation8 + $0xc0] sm:$0xff] }
  0x23   :  { %260 = vmatpush.msra.mxu2 %v245_v63  ;;  %280 = vmatpush.msra.mxu3 %v246_v0 }
  0x24   :  { %163 = vmatpush.msra.mxu1 %v148_v17  ;;  %300 = vmatpush.msrb.mxu0 %v247_v1  ;;  %v235_v17 = vld [vmem:[#allocation8 + $0xd0] sm:$0xff] }
  0x25   :  { %261 = vmatpush.msra.mxu2 %v242_v3  ;;  %281 = vmatpush.msra.mxu3 %v243_v4 }
  0x26   :  { %164 = vmatpush.msra.mxu1 %v147_v19  ;;  %301 = vmatpush.msrb.mxu0 %v244_v5  ;;  %v230_v19 = vld [vmem:[#allocation8 + $0xa8] sm:$0xff] }
  0x27   :  { %282 = vmatpush.msra.mxu3 %v240_v8 }
  0x28   :  { %165 = vmatpush.msra.mxu1 %v146_v21  ;;  %v232_v21 = vld [vmem:[#allocation8 + $0xb8] sm:$0xff] }
  0x2a   :  { %166 = vmatpush.msra.mxu1 %v145_v23  ;;  %v227_v23 = vld [vmem:[#allocation8 + $0x90] sm:$0xff] }
  0x2c   :  { %167 = vmatpush.msra.mxu1 %v144_v25  ;;  %v229_v25 = vld [vmem:[#allocation8 + $0xa0] sm:$0xff] }
  0x2e   :  { %168 = vmatpush.msra.mxu1 %v143_v27  ;;  %v224_v27 = vld [vmem:[#allocation8 + $0x78] sm:$0xff] }
  0x30   :  { %169 = vmatpush.msra.mxu1 %v142_v29  ;;  %v226_v29 = vld [vmem:[#allocation8 + $0x88] sm:$0xff] }
  0x32   :  { %170 = vmatpush.msra.mxu1 %v141_v31  ;;  %v221_v31 = vld [vmem:[#allocation8 + $0x60] sm:$0xff] }
  0x34   :  { %171 = vmatpush.msra.mxu1 %v140_v33  ;;  %v223_v33 = vld [vmem:[#allocation8 + $0x70] sm:$0xff] }
  0x9b   :  { %v104_v6 = vpop.f32.mrf.mxu0 }
  0x9c   :  { %v109_v7 = vrot.slane %v104_v6, 4 }
  0x9e   :  { %v110_v9 = vadd.f32 %v109_v7, %v104_v6  ;;  %v239_v7 = vld [vmem:[#allocation8 + $0xf0] sm:$0xff] }
  0x9f   :  { %262 = vmatpush.msra.mxu2 %v239_v7 }
  0xa0   :  { %v111_v12 = vrot.slane %v110_v9, 2 }
  0xa1   :  { %263 = vmatpush.msra.mxu2 %v236_v11 }
  0xa2   :  { %v112_v14 = vadd.f32 %v111_v12, %v110_v9  ;;  %v241_v9 = vld [vmem:[#allocation8 + $0x100] sm:$0xff] }
  0xa3   :  { %302 = vmatpush.msrb.mxu0 %v241_v9  ;;  %v237_v12 = vld [vmem:[#allocation8 + $0xe0] sm:$0xff]  ;;  %264 = vmatpush.msra.mxu2 %v233_v15  ;;  %v467_v15 = vld [vmem:[#allocation6 + $0x180] sm:$0xff] }
  0xa4   :  { %v113_v16 = vrot.slane %v112_v14, 1  ;;  %283 = vmatpush.msra.mxu3 %v237_v12 }
  0xa5   :  { %303 = vmatpush.msrb.mxu0 %v238_v13  ;;  %265 = vmatpush.msra.mxu2 %v230_v19 }
  0xa6   :  { %v114_v18 = vadd.f32 %v113_v16, %v112_v14  ;;  %v234_v16 = vld [vmem:[#allocation8 + $0xc8] sm:$0xff] }
  0xa7   :  { %284 = vmatpush.msra.mxu3 %v234_v16  ;;  %304 = vmatpush.msrb.mxu0 %v235_v17  ;;  %v483_v16 = vld [vmem:[#allocation6 + $0x200] sm:$0xff] }
  0xa8   :  { %v115_v20 = vmul.f32 0.125, %v114_v18  ;;  %266 = vmatpush.msra.mxu2 %v227_v23 }
  0xa9   :  { %305 = vmatpush.msrb.mxu0 %v232_v21  ;;  %v466_v21 = vld [vmem:[#allocation6 + $0x178] sm:$0xff] }
  0xaa   :  { %v116_v22 = vsub.f32 %v104_v6, %v115_v20  ;;  %v231_v20 = vld [vmem:[#allocation8 + $0xb0] sm:$0xff]  ;;  %267 = vmatpush.msra.mxu2 %v224_v27  ;;  %v465_v27 = vld [vmem:[#allocation6 + $0x170] sm:$0xff] }
  0xab   :  { %285 = vmatpush.msra.mxu3 %v231_v20  ;;  %306 = vmatpush.msrb.mxu0 %v229_v25  ;;  %v450_v20 = vld [vmem:[#allocation6 + $0xf8] sm:$0xff] }
  0xac   :  { %v117_v24 = vmul.f32 %v116_v22, %v116_v22  ;;  %268 = vmatpush.msra.mxu2 %v221_v31 }
  0xad   :  { %307 = vmatpush.msrb.mxu0 %v226_v29 }
  0xae   :  { %v118_v26 = vrot.slane %v117_v24, 4 }
  0xaf   :  { %308 = vmatpush.msrb.mxu0 %v223_v33  ;;  %v464_v33 = vld [vmem:[#allocation6 + $0x168] sm:$0xff] }
  0xb0   :  { %v119_v28 = vadd.f32 %v118_v26, %v117_v24  ;;  %v228_v24 = vld [vmem:[#allocation8 + $0x98] sm:$0xff] }
  0xb1   :  { %286 = vmatpush.msra.mxu3 %v228_v24 }
  0xb2   :  { %v120_v30 = vrot.slane %v119_v28, 2 }
  0xb4   :  { %v121_v32 = vadd.f32 %v120_v30, %v119_v28  ;;  %v225_v28 = vld [vmem:[#allocation8 + $0x80] sm:$0xff] }
  0xb5   :  { %287 = vmatpush.msra.mxu3 %v225_v28  ;;  %v481_v28 = vld [vmem:[#allocation6 + $0x1f0] sm:$0xff] }
  0xb6   :  { %v122_v34 = vrot.slane %v121_v32, 1 }
  0xb8   :  { %v123_v35 = vadd.f32 %v122_v34, %v121_v32  ;;  %v222_v32 = vld [vmem:[#allocation8 + $0x68] sm:$0xff] }
  0xb9   :  { %288 = vmatpush.msra.mxu3 %v222_v32  ;;  %v448_v32 = vld [vmem:[#allocation6 + $0xe8] sm:$0xff] }
  0xba   :  { %v124_v36 = vmul.f32 0.125, %v123_v35  ;;  %v218_v35 = vld [vmem:[#allocation8 + $0x48] sm:$0xff] }
  0xbb   :  { %269 = vmatpush.msra.mxu2 %v218_v35 }
  0xbc   :  { %v125_v37 = vadd.f32 1e-05, %v124_v36  ;;  %v219_v36 = vld [vmem:[#allocation8 + $0x50] sm:$0xff] }
  0xbd   :  { %289 = vmatpush.msra.mxu3 %v219_v36 }
  0xbe   :  { %576 = vrsqrt.f32 %v125_v37  ;;  %vm132_vm3 = vweird.f32 %v125_v37 }
  0xc4   :  { %v577_v38 = vpop.eup %576 }
  0xc5   :  { %v127_v39 = vmul.f32 %v577_v38, %v125_v37  ;;  %vm133_vm2 = vweird.f32 %v577_v38  ;;  %v220_v37 = vld [vmem:[#allocation8 + $0x58] sm:$0xff] }
  0xc6   :  { %vm134_vm4 = vmor %vm132_vm3, %vm133_vm2  ;;  %309 = vmatpush.msrb.mxu0 %v220_v37  ;;  %vm409_vm2 = vcmask 1041408  }
  0xc7   :  { %v128_v40 = vmul.f32 %v577_v38, %v127_v39  ;;  %v215_v39 = vld [vmem:[#allocation8 + $0x30] sm:$0xff] }
  0xc8   :  { %270 = vmatpush.msra.mxu2 %v215_v39  ;;  %v463_v39 = vld [vmem:[#allocation6 + $0x160] sm:$0xff] }
  0xc9   :  { %v129_v41 = vmul.f32 0.5, %v128_v40  ;;  %v216_v40 = vld [vmem:[#allocation8 + $0x38] sm:$0xff] }
  0xca   :  { %290 = vmatpush.msra.mxu3 %v216_v40  ;;  %v479_v40 = vld [vmem:[#allocation6 + $0x1e0] sm:$0xff] }
  0xcb   :  { %v130_v42 = vsub.f32 1.5, %v129_v41  ;;  %v217_v41 = vld [vmem:[#allocation8 + $0x40] sm:$0xff] }
  0xcc   :  { %310 = vmatpush.msrb.mxu0 %v217_v41 }
  0xcd   :  { %v131_v44 = vmul.f32 %v577_v38, %v130_v42  ;;  %v212_v42 = vld [vmem:[#allocation8 + $0x18] sm:$0xff] }
  0xce   :  { %271 = vmatpush.msra.mxu2 %v212_v42 }
  0xcf   :  { %v135_v45 = vsel %vm134_vm4, %v577_v38, %v131_v44  ;;  %v214_v44 = vld [vmem:[#allocation8 + $0x28] sm:$0xff] }
  0xd0   :  { %v136_v46 = vmul.f32 %v135_v45, %v107_v43  ;;  %v213_v43 = vld [vmem:[#allocation8 + $0x20] sm:$0xff]  ;;  %311 = vmatpush.msrb.mxu0 %v214_v44  ;;  %v446_v44 = vld [vmem:[#allocation6 + $0xd8] sm:$0xff] }
  0xd1   :  { %291 = vmatpush.msra.mxu3 %v213_v43 }
  0xd2   :  { %v137_v48 = vmul.f32 %v136_v46, %v116_v22  ;;  %v209_v46 = vld [vmem:[#allocation8] sm:$0xff] }
  0xd3   :  { %272 = vmatpush.msra.mxu2 %v209_v46  ;;  %v478_v46 = vld [vmem:[#allocation6 + $0x1d8] sm:$0xff] }
  0xd4   :  { %v138_v49 = vadd.f32 %v137_v48, %v108_v47  ;;  %v210_v47 = vld [vmem:[#allocation8 + $0x8] sm:$0xff]  ;;  %v211_v48 = vld [vmem:[#allocation8 + $0x10] sm:$0xff] }
  0xd5   :  { %292 = vmatpush.msra.mxu3 %v210_v47  ;;  %312 = vmatpush.msrb.mxu0 %v211_v48 }
  0xd6   :  { %v139_v50 = vmax.f32 %v138_v49, 0.0  ;;  %505 = vmatpush.msrb.mxu2 %v467_v15 }
  0xd7   :  { %525 = vmatpush.msrb.mxu3 %v483_v16  ;;  %v440_v16 = vld [vmem:[#allocation6 + $0xa8] sm:$0xff] }
  0xd8   :  { %172 = vmatmul.f32.vlgmr.msra.gmra.mxu1 %v139_v50  ;;  %506 = vmatpush.msrb.mxu2 %v466_v21 }
  0xda   :  { %507 = vmatpush.msrb.mxu2 %v465_v27  ;;  %v438_v27 = vld [vmem:[#allocation6 + $0x98] sm:$0xff] }
  0xdc   :  { %508 = vmatpush.msrb.mxu2 %v464_v33  ;;  %v437_v33 = vld [vmem:[#allocation6 + $0x90] sm:$0xff] }
  0xde   :  { %509 = vmatpush.msrb.mxu2 %v463_v39 }
 0x155   :  { %v173_v57 = vpop.f32.mrf.mxu1 }
 0x156   :  { %v178_v58 = vrot.slane %v173_v57, 4 }
 0x158   :  { %v179_v62 = vadd.f32 %v178_v58, %v173_v57  ;;  %v176_v58 = vld [vmem:[#allocation9 + $0x2] ss:$0 sm:$0xff] }
 0x15a   :  { %v180_v2 = vrot.slane %v179_v62, 2 }
 0x15c   :  { %v181_v6 = vadd.f32 %v180_v2, %v179_v62  ;;  %v177_v62 = vld [vmem:[#allocation9 + $0x3] ss:$0 sm:$0xff] }
 0x15e   :  { %v182_v10 = vrot.slane %v181_v6, 1 }
 0x160   :  { %v183_v14 = vadd.f32 %v182_v10, %v181_v6 }
 0x162   :  { %v184_v18 = vmul.f32 0.125, %v183_v14  ;;  %v451_v14 = vld [vmem:[#allocation6 + $0x100] sm:$0xff] }
 0x163   :  { %485 = vmatpush.msrb.mxu1 %v451_v14 }
 0x164   :  { %v761_v22 = vsub.f32 %v173_v57, %v184_v18 }
 0x165   :  { %486 = vmatpush.msrb.mxu1 %v450_v20 }
 0x166   :  { %v186_v26 = vmul.f32 %v761_v22, %v761_v22 }
 0x168   :  { %v187_v30 = vrot.slane %v186_v26, 4 }
 0x16a   :  { %v188_v34 = vadd.f32 %v187_v30, %v186_v26  ;;  %v449_v26 = vld [vmem:[#allocation6 + $0xf0] sm:$0xff] }
 0x16b   :  { %487 = vmatpush.msrb.mxu1 %v449_v26 }
 0x16c   :  { %v189_v38 = vrot.slane %v188_v34, 2 }
 0x16d   :  { %488 = vmatpush.msrb.mxu1 %v448_v32 }
 0x16e   :  { %v190_v45 = vadd.f32 %v189_v38, %v188_v34  ;;  %v480_v34 = vld [vmem:[#allocation6 + $0x1e8] sm:$0xff]  ;;  %v447_v38 = vld [vmem:[#allocation6 + $0xe0] sm:$0xff] }
 0x16f   :  { %489 = vmatpush.msrb.mxu1 %v447_v38 }
 0x170   :  { %v191_v49 = vrot.slane %v190_v45, 1 }
 0x171   :  { %490 = vmatpush.msrb.mxu1 %v446_v44 }
 0x172   :  { %v192_v50 = vadd.f32 %v191_v49, %v190_v45  ;;  %v462_v45 = vld [vmem:[#allocation6 + $0x158] sm:$0xff] }
 0x173   :  { %510 = vmatpush.msrb.mxu2 %v462_v45 }
 0x174   :  { %v193_v51 = vmul.f32 0.125, %v192_v50  ;;  %v445_v50 = vld [vmem:[#allocation6 + $0xd0] sm:$0xff] }
 0x175   :  { %491 = vmatpush.msrb.mxu1 %v445_v50 }
 0x176   :  { %v194_v52 = vadd.f32 1e-05, %v193_v51  ;;  %v461_v51 = vld [vmem:[#allocation6 + $0x150] sm:$0xff] }
 0x177   :  { %511 = vmatpush.msrb.mxu2 %v461_v51 }
 0x178   :  { %578 = vrsqrt.f32 %v194_v52  ;;  %vm201_vm6 = vweird.f32 %v194_v52 }
 0x17e   :  { %v579_v53 = vpop.eup %578 }
 0x17f   :  { %v196_v54 = vmul.f32 %v579_v53, %v194_v52  ;;  %vm202_vm5 = vweird.f32 %v579_v53 }
 0x180   :  { %vm203_vm7 = vmor %vm201_vm6, %vm202_vm5 }
 0x181   :  { %v197_v55 = vmul.f32 %v579_v53, %v196_v54  ;;  %v477_v54 = vld [vmem:[#allocation6 + $0x1d0] sm:$0xff] }
 0x183   :  { %v198_v56 = vmul.f32 0.5, %v197_v55 }
 0x185   :  { %v199_v57 = vsub.f32 1.5, %v198_v56  ;;  %v444_v56 = vld [vmem:[#allocation6 + $0xc8] sm:$0xff] }
 0x186   :  { %492 = vmatpush.msrb.mxu1 %v444_v56 }
 0x187   :  { %v200_v59 = vmul.f32 %v579_v53, %v199_v57  ;;  %v460_v57 = vld [vmem:[#allocation6 + $0x148] sm:$0xff] }
 0x188   :  { %512 = vmatpush.msrb.mxu2 %v460_v57 }
 0x189   :  { %v204_v60 = vsel %vm203_vm7, %v579_v53, %v200_v59 }
 0x18a   :  { %v205_v61 = vmul.f32 %v204_v60, %v176_v58  ;;  %v476_v58 = vld [vmem:[#allocation6 + $0x1c8] sm:$0xff] }
 0x18c   :  { %v206_v63 = vmul.f32 %v205_v61, %v761_v22  ;;  %v482_v22 = vld [vmem:[#allocation6 + $0x1f8] sm:$0xff] }
 0x18d   :  { %526 = vmatpush.msrb.mxu3 %v482_v22  ;;  %v439_v22 = vld [vmem:[#allocation6 + $0xa0] sm:$0xff] }
 0x18e   :  { %v207_v0 = vadd.f32 %v206_v63, %v177_v62  ;;  %v443_v62 = vld [vmem:[#allocation6 + $0xc0] sm:$0xff] }
 0x18f   :  { %527 = vmatpush.msrb.mxu3 %v481_v28  ;;  %v459_v63 = vld [vmem:[#allocation6 + $0x140] sm:$0xff]  ;;  %493 = vmatpush.msrb.mxu1 %v443_v62  ;;  %v454_v28 = vld [vmem:[#allocation6 + $0x118] sm:$0xff] }
 0x190   :  { %v208_v1 = vmax.f32 %v207_v0, 0.0  ;;  %v475_v0 = vld [vmem:[#allocation6 + $0x1c0] sm:$0xff]  ;;  %513 = vmatpush.msrb.mxu2 %v459_v63 }
 0x191   :  { %528 = vmatpush.msrb.mxu3 %v480_v34  ;;  %v453_v34 = vld [vmem:[#allocation6 + $0x110] sm:$0xff] }
 0x192   :  { %273 = vmatmul.f32.vlgmr.msra.gmra.mxu2 %v208_v1  ;;  %293 = vmatmul.f32.vlgmr.msra.gmra.mxu3 %v208_v1 }
 0x193   :  { %313 = vmatmul.f32.vlgmr.msrb.gmra.mxu0 %v208_v1  ;;  %529 = vmatpush.msrb.mxu3 %v479_v40  ;;  %v468_v40 = vld [vmem:[#allocation6 + $0x188] sm:$0xff] }
 0x195   :  { %530 = vmatpush.msrb.mxu3 %v478_v46 }
 0x197   :  { %531 = vmatpush.msrb.mxu3 %v477_v54 }
 0x199   :  { %532 = vmatpush.msrb.mxu3 %v476_v58 }
 0x19b   :  { %533 = vmatpush.msrb.mxu3 %v475_v0  ;;  %v318_v0 = vld [vmem:[#allocation9 + $0x4] ss:$8 sm:$0x7] }
 0x210   :  { %v314_v2 = vpop.f32.mrf.mxu0 }
 0x211   :  { %v333_v3 = vrot.slane %v314_v2, 4 }
 0x213   :  { %v334_v4 = vadd.f32 %v333_v3, %v314_v2 }
 0x215   :  { %v335_v5 = vrot.slane %v334_v4, 2  ;;  %v274_v6 = vpop.f32.mrf.mxu2  ;;  %v294_v7 = vpop.f32.mrf.mxu3 }
 0x216   :  { %v321_v8 = vrot.slane %v274_v6, 4  ;;  %v327_v9 = vrot.slane %v294_v7, 4 }
 0x217   :  { %v336_v10 = vadd.f32 %v335_v5, %v334_v4  ;;  %v442_v4 = vld [vmem:[#allocation6 + $0xb8] sm:$0xff] }
 0x218   :  { %v322_v11 = vadd.f32 %v321_v8, %v274_v6  ;;  %v328_v12 = vadd.f32 %v327_v9, %v294_v7  ;;  %v458_v5 = vld [vmem:[#allocation6 + $0x138] sm:$0xff]  ;;  %494 = vmatpush.msrb.mxu1 %v442_v4 }
 0x219   :  { %v337_v13 = vrot.slane %v336_v10, 1  ;;  %514 = vmatpush.msrb.mxu2 %v458_v5  ;;  %v320_v4 = vld [vmem:[#allocation9 + $0x5] ss:$8 sm:$0x7] }
 0x21a   :  { %v323_v17 = vrot.slane %v322_v11, 2  ;;  %v329_v18 = vrot.slane %v328_v12, 2 }
 0x21b   :  { %v338_v19 = vadd.f32 %v337_v13, %v336_v10  ;;  %v441_v10 = vld [vmem:[#allocation6 + $0xb0] sm:$0xff] }
 0x21c   :  { %v324_v23 = vadd.f32 %v323_v17, %v322_v11  ;;  %v330_v24 = vadd.f32 %v329_v18, %v328_v12  ;;  %v457_v11 = vld [vmem:[#allocation6 + $0x130] sm:$0xff]  ;;  %495 = vmatpush.msrb.mxu1 %v441_v10  ;;  %v456_v17 = vld [vmem:[#allocation6 + $0x128] sm:$0xff] }
 0x21d   :  { %v341_v25 = vmul.f32 0.125, %v338_v19  ;;  %v473_v12 = vld [vmem:[#allocation6 + $0x1b0] sm:$0xff]  ;;  %515 = vmatpush.msrb.mxu2 %v457_v11  ;;  %v472_v18 = vld [vmem:[#allocation6 + $0x1a8] sm:$0xff] }
 0x21e   :  { %v325_v29 = vrot.slane %v324_v23, 1  ;;  %v331_v30 = vrot.slane %v330_v24, 1  ;;  %496 = vmatpush.msrb.mxu1 %v440_v16 }
 0x21f   :  { %v766_v31 = vsub.f32 %v314_v2, %v341_v25  ;;  %516 = vmatpush.msrb.mxu2 %v456_v17 }
 0x220   :  { %v326_v35 = vadd.f32 %v325_v29, %v324_v23  ;;  %v332_v36 = vadd.f32 %v331_v30, %v330_v24  ;;  %v455_v23 = vld [vmem:[#allocation6 + $0x120] sm:$0xff]  ;;  %497 = vmatpush.msrb.mxu1 %v439_v22  ;;  %v470_v29 = vld [vmem:[#allocation6 + $0x198] sm:$0xff]  ;;  %v484_v22 = vld [vmem:[#allocation9 + $0x6] ss:$0 sm:$0xff] }
 0x221   :  { %v347_v37 = vmul.f32 %v766_v31, %v766_v31  ;;  %v471_v24 = vld [vmem:[#allocation6 + $0x1a0] sm:$0xff]  ;;  %517 = vmatpush.msrb.mxu2 %v455_v23 }
 0x222   :  { %v339_v41 = vmul.f32 0.125, %v326_v35  ;;  %v340_v42 = vmul.f32 0.125, %v332_v36  ;;  %498 = vmatpush.msrb.mxu1 %v438_v27  ;;  %v469_v35 = vld [vmem:[#allocation6 + $0x190] sm:$0xff]  ;;  %v436_v36 = vld [vmem:[#allocation6 + $0x88] sm:$0xff] }
 0x223   :  { %v360_v43 = vrot.slane %v347_v37, 4  ;;  %518 = vmatpush.msrb.mxu2 %v454_v28 }
 0x224   :  { %v770_v47 = vsub.f32 %v274_v6, %v339_v41  ;;  %v772_v48 = vsub.f32 %v294_v7, %v340_v42  ;;  %v474_v6 = vld [vmem:[#allocation6 + $0x1b8] sm:$0xff]  ;;  %499 = vmatpush.msrb.mxu1 %v437_v33 }
 0x225   :  { %v361_v49 = vadd.f32 %v360_v43, %v347_v37  ;;  %534 = vmatpush.msrb.mxu3 %v474_v6  ;;  %v452_v37 = vld [vmem:[#allocation6 + $0x108] sm:$0xff]  ;;  %519 = vmatpush.msrb.mxu2 %v453_v34 }
 0x226   :  { %v345_v52 = vmul.f32 %v770_v47, %v770_v47  ;;  %v346_v53 = vmul.f32 %v772_v48, %v772_v48  ;;  %500 = vmatpush.msrb.mxu1 %v436_v36 }
 0x227   :  { %v362_v55 = vrot.slane %v361_v49, 2  ;;  %535 = vmatpush.msrb.mxu3 %v473_v12  ;;  %520 = vmatpush.msrb.mxu2 %v452_v37  ;;  %v426_v12 = vperm.slane %v320_v4, 2 }
 0x228   :  { %v348_v59 = vrot.slane %v345_v52, 4  ;;  %v354_v60 = vrot.slane %v346_v53, 4 }
 0x229   :  { %v363_v61 = vadd.f32 %v362_v55, %v361_v49  ;;  %536 = vmatpush.msrb.mxu3 %v472_v18 }
 0x22a   :  { %v349_v1 = vadd.f32 %v348_v59, %v345_v52  ;;  %v355_v2 = vadd.f32 %v354_v60, %v346_v53 }
 0x22b   :  { %v364_v3 = vrot.slane %v363_v61, 1  ;;  %537 = vmatpush.msrb.mxu3 %v471_v24 }
 0x22c   :  { %v350_v7 = vrot.slane %v349_v1, 2  ;;  %v356_v8 = vrot.slane %v355_v2, 2 }
 0x22d   :  { %v365_v9 = vadd.f32 %v364_v3, %v363_v61  ;;  %538 = vmatpush.msrb.mxu3 %v470_v29 }
 0x22e   :  { %v351_v13 = vadd.f32 %v350_v7, %v349_v1  ;;  %v357_v14 = vadd.f32 %v356_v8, %v355_v2  ;;  %v424_v7 = vperm.slane %v320_v4, 0  ;;  %v425_v8 = vperm.slane %v320_v4, 1 }
 0x22f   :  { %v368_v15 = vmul.f32 0.125, %v365_v9  ;;  %539 = vmatpush.msrb.mxu3 %v469_v35 }
 0x230   :  { %v352_v19 = vrot.slane %v351_v13, 1  ;;  %v358_v20 = vrot.slane %v357_v14, 1 }
 0x231   :  { %v371_v21 = vadd.f32 1e-05, %v368_v15  ;;  %540 = vmatpush.msrb.mxu3 %v468_v40 }
 0x232   :  { %v353_v25 = vadd.f32 %v352_v19, %v351_v13  ;;  %v359_v26 = vadd.f32 %v358_v20, %v357_v14 }
 0x233   :  { %580 = vrsqrt.f32 %v371_v21  ;;  %vm398_vm10 = vweird.f32 %v371_v21 }
 0x234   :  { %v366_v30 = vmul.f32 0.125, %v353_v25  ;;  %v367_v32 = vmul.f32 0.125, %v359_v26 }
 0x236   :  { %v369_v38 = vadd.f32 1e-05, %v366_v30  ;;  %v370_v39 = vadd.f32 1e-05, %v367_v32 }
 0x238   :  { %582 = vrsqrt.f32 %v369_v38  ;;  %vm388_vm13 = vweird.f32 %v370_v39  ;;  %vm378_vm15 = vweird.f32 %v369_v38 }
 0x239   :  { %v581_v41 = vpop.eup %580  ;;  %584 = vrsqrt.f32 %v370_v39 }
 0x23a   :  { %v393_v42 = vmul.f32 %v581_v41, %v371_v21  ;;  %vm399_vm8 = vweird.f32 %v581_v41 }
 0x23b   :  { %vm400_vm11 = vmor %vm398_vm10, %vm399_vm8 }
 0x23c   :  { %v394_v43 = vmul.f32 %v581_v41, %v393_v42 }
 0x23e   :  { %v583_v44 = vpop.eup %582  ;;  %v395_v45 = vmul.f32 0.5, %v394_v43 }
 0x23f   :  { %v585_v46 = vpop.eup %584  ;;  %v373_v49 = vmul.f32 %v583_v44, %v369_v38  ;;  %vm379_vm12 = vweird.f32 %v583_v44 }
 0x240   :  { %v383_v50 = vmul.f32 %v585_v46, %v370_v39  ;;  %v396_v51 = vsub.f32 1.5, %v395_v45  ;;  %vm389_vm9 = vweird.f32 %v585_v46  ;;  %vm380_vm1 = vmor %vm378_vm15, %vm379_vm12 }
 0x241   :  { %v374_v52 = vmul.f32 %v583_v44, %v373_v49  ;;  %vm390_vm14 = vmor %vm388_vm13, %vm389_vm9 }
 0x242   :  { %v384_v53 = vmul.f32 %v585_v46, %v383_v50  ;;  %v397_v56 = vmul.f32 %v581_v41, %v396_v51 }
 0x243   :  { %v375_v54 = vmul.f32 0.5, %v374_v52 }
 0x244   :  { %v385_v55 = vmul.f32 0.5, %v384_v53  ;;  %v401_v61 = vsel %vm400_vm11, %v581_v41, %v397_v56 }
 0x245   :  { %v376_v57 = vsub.f32 1.5, %v375_v54  ;;  %v406_v2 = vrot.slane %v401_v61, 6 }
 0x246   :  { %v386_v58 = vsub.f32 1.5, %v385_v55 }
 0x247   :  { %v377_v59 = vmul.f32 %v583_v44, %v376_v57 }
 0x248   :  { %v387_v60 = vmul.f32 %v585_v46, %v386_v58 }
 0x249   :  { %v381_v1 = vsel %vm380_vm1, %v583_v44, %v377_v59 }
 0x24a   :  { %v391_v62 = vsel %vm390_vm14, %v585_v46, %v387_v60 }
 0x24b   :  { %v405_v63 = vrot.slane %v391_v62, 7 }
 0x24d   :  { %v408_v3 = vsel %vm407_vm0, %v381_v1, %v405_v63 }
 0x24e   :  { %v410_v5 = vsel %vm409_vm2, %v408_v3, %v406_v2 }
 0x24f   :  { %v412_v6 = vmul.f32 %v410_v5, %v318_v0 }
 0x251   :  { %v415_v9 = vperm.slane %v412_v6, 1  ;;  %v414_v10 = vperm.slane %v412_v6, 0  ;;  %v416_v11 = vperm.slane %v412_v6, 2 }
 0x253   :  { %v421_v13 = vmul.f32 %v415_v9, %v772_v48  ;;  %v420_v14 = vmul.f32 %v414_v10, %v770_v47  ;;  %v422_v15 = vmul.f32 %v416_v11, %v766_v31 }
 0x255   :  { %v430_v16 = vadd.f32 %v424_v7, %v420_v14  ;;  %v431_v17 = vadd.f32 %v425_v8, %v421_v13  ;;  %v432_v18 = vadd.f32 %v426_v12, %v422_v15 }
 0x257   :  { %v433_v19 = vmax.f32 %v430_v16, 0.0  ;;  %v434_v20 = vmax.f32 %v431_v17, 0.0  ;;  %v435_v21 = vmax.f32 %v432_v18, 0.0 }
 0x259   :  { %501 = vmatmul.f32.vlgmr.msrb.gmra.mxu1 %v433_v19  ;;  %521 = vmatmul.f32.vlgmr.msrb.gmra.mxu2 %v434_v20 }
 0x25a   :  { %541 = vmatmul.f32.vlgmr.msrb.gmra.mxu3 %v435_v21 }
 0x2d6   :  { %v502_v23 = vpop.f32.mrf.mxu1 }
 0x2d7   :  { %v503_v24 = vadd.f32 %v502_v23, %v484_v22 }
 0x2dc   :  { %v522_v25 = vpop.f32.mrf.mxu2 }
 0x2dd   :  { %v523_v31 = vadd.f32 %v522_v25, %v503_v24  ;;  %v542_v47 = vpop.f32.mrf.mxu3 }
 0x2df   :  { %v543_v48 = vadd.f32 %v542_v47, %v523_v31 }
 0x2e1   :  { %545 = vst [vmem:[#allocation11] sm:$0xff] %v543_v48 }
 0x2e2   :  { %556 = dma.vmem_to_hbm [thread:$0]  %s552_s3, 128, %s554_s13, [#allocation5]  }
 0x2e3   :  { %712 = dma.done.wait [#allocation5], 128  }
 0x2e4   :  { %713 = vsyncadd [#allocation5], 4294967168 }
 0x2e5   :  { %561 = vsyncpa [#allocation4], 1 }
 0x2e6   :  { %562 = vsyncpa [#allocation7], 1 }
 0x2e7   :  { %563 = vsyncpa [#allocation10], 1 }
 0x2e8   :  { %564 = vsyncpa [#allocation5], 1 }

</bundles_post_ra>
